<compile_context>
chip_gen: v6e
topology: v6e:2x2x1
jax: 0.10.0
libtpu: 0.0.40
codegen_flags: <defaults>
</compile_context>

<pallas_src>
import jax
import jax.numpy as jnp
from jax.experimental import pallas as pl
from jax.experimental.pallas import tpu as pltpu


def _softplus(x):
    # Matches torch.nn.Softplus(beta=1, threshold=20).
    return jnp.where(x > 20.0, x, jnp.log1p(jnp.exp(jnp.minimum(x, 20.0))))


def _make_kernel(num_hidden: int, transform, mm_dtype, slim: bool):
    """Fused kernel for a fixed layer count / transform / matmul dtype / output mode."""
    recip_approx = (jnp.dtype(mm_dtype) != jnp.dtype(jnp.float32))

    def kernel(x_ref, w_ls_ref, w0_ref, b0_ref, *rest):
        # rest = (w1, b1, ..., w_{H-1}, b_{H-1}, w_out, b_out, out_ref)
        out_ref = rest[-1]
        layer_refs = rest[:-1]

        x = x_ref[...]                                               # (TILE_N, G), native dtype
        counts = jnp.sum(x, axis=-1, keepdims=True, dtype=jnp.float32)  # f32 accumulate
        log_sum = jnp.log1p(counts)

        if transform == 'log':
            xin = jnp.log1p(x.astype(jnp.float32)).astype(mm_dtype)
        else:  # None, or 'normalize' (divide is folded to after the matmul)
            xin = x if x.dtype == jnp.dtype(mm_dtype) else x.astype(mm_dtype)

        # ---- folded first layer: log_sum*w_ls + xt @ (W_a + W_b) + (b0 - chi@W_b) ----
        h = jnp.dot(xin, w0_ref[...], preferred_element_type=jnp.float32)

        if transform == 'normalize':
            # (x / counts) @ W == (x @ W) * (1 / counts).  Guard counts == 0 so the
            # all-zero padded rows stay finite (torch NaNs for truly empty rows; those
            # rows are sliced away by the wrapper, real rows are unchanged).
            safe = jnp.where(counts == 0.0, 1.0, counts)
            h = h * pl.reciprocal(safe, approx=recip_approx)

        h = _softplus(h + log_sum * w_ls_ref[...] + b0_ref[...])

        # ---- remaining hidden layers ----
        for i in range(num_hidden - 1):
            w = layer_refs[2 * i][...]
            b = layer_refs[2 * i + 1][...]
            h = _softplus(jnp.dot(h.astype(mm_dtype), w,
                                  preferred_element_type=jnp.float32) + b)

        # ---- output layer (logit) ----
        if slim:
            # output_dim == 1: VPU matvec + lane reduce, 4 B/row writeback.
            w_row = layer_refs[-2][...]          # (1, H_last) f32
            b_out = layer_refs[-1][...]          # (1, 1) f32
            out_ref[...] = jnp.sum(h * w_row, axis=-1, keepdims=True) + b_out
        else:
            w_out = layer_refs[-2][...]          # (H_last, out_pad)
            b_out = layer_refs[-1][...]          # (1, out_pad)
            out_ref[...] = jnp.dot(h.astype(mm_dtype), w_out,
                                   preferred_element_type=jnp.float32) + b_out

    return kernel


def init_params(key, input_dim, hidden_dims, output_dim, log_count_crossover):
    """Deterministic synthetic init mirroring the torch module's __init__."""
    INITIAL_WEIGHT_FOR_LOG_COUNTS = 1.0
    INITIAL_OUTPUT_SCALE_FOR_LOG_COUNTS = 5.0
    INITIAL_OUTPUT_BIAS_FOR_LOG_COUNTS = -INITIAL_OUTPUT_SCALE_FOR_LOG_COUNTS

    in_dims = [1 + 2 * input_dim] + list(hidden_dims[:-1])
    weights, biases = [], []
    for fi, fo in zip(in_dims, hidden_dims):
        key, k1, k2 = jax.random.split(key, 3)
        bound = 1.0 / jnp.sqrt(jnp.float32(fi))
        w = jax.random.uniform(k1, (fo, fi), jnp.float32, -bound, bound)
        b = jax.random.uniform(k2, (fo,), jnp.float32, -bound, bound)
        w = w.at[0, 0].set(INITIAL_WEIGHT_FOR_LOG_COUNTS)
        weights.append(w)
        biases.append(b)

    key, k1 = jax.random.split(key)
    bound = 1.0 / jnp.sqrt(jnp.float32(hidden_dims[-1]))
    w_out = jax.random.uniform(k1, (output_dim, hidden_dims[-1]), jnp.float32,
                               -bound, bound)
    w_out = w_out.at[0, 0].set(INITIAL_OUTPUT_SCALE_FOR_LOG_COUNTS)
    b_out = jnp.full((output_dim,),
                     INITIAL_OUTPUT_BIAS_FOR_LOG_COUNTS * log_count_crossover,
                     jnp.float32)
    return {'hidden_w': weights, 'hidden_b': biases, 'out_w': w_out, 'out_b': b_out}


def prepare_params(params, chi_ambient, *, input_dim,
                   matmul_dtype=jnp.bfloat16, out_lanes=128):
    """One-time param prep: transpose to (in,out), fold layer-0, choose output mode."""
    G = input_dim
    chi = chi_ambient.reshape(1, G).astype(jnp.float32)

    # ---- layer 0 fold ----
    w0_t = jnp.transpose(params['hidden_w'][0]).astype(jnp.float32)   # (1+2G, H0)
    b0 = params['hidden_b'][0].reshape(1, -1).astype(jnp.float32)
    w_ls = w0_t[0:1, :]                                               # log_sum column
    w_a = w0_t[1:1 + G, :]
    w_b = w0_t[1 + G:1 + 2 * G, :]
    w_fold = (w_a + w_b).astype(matmul_dtype)                         # (G, H0)
    b0_fold = (b0 - chi @ w_b).astype(jnp.float32)                    # (1, H0), f32 fold

    operands = [w_ls, w_fold, b0_fold]
    hidden_sum = int(w_fold.shape[1])

    # ---- remaining hidden layers ----
    for w, b in zip(params['hidden_w'][1:], params['hidden_b'][1:]):
        operands.append(jnp.transpose(w).astype(matmul_dtype))
        operands.append(b.reshape(1, -1).astype(jnp.float32))
        hidden_sum += int(w.shape[0])

    # ---- output layer ----
    w_out = params['out_w']                      # (output_dim, H_last)
    output_dim = int(w_out.shape[0])
    slim = (output_dim == 1)
    if slim:
        # slim path: (1, H_last) weight row + (1,1) bias; 4 B/row writeback.
        operands.append(w_out.astype(jnp.float32))
        operands.append(params['out_b'].reshape(1, 1).astype(jnp.float32))
        out_pad = 1
    else:
        out_pad = max(out_lanes, -(-output_dim // out_lanes) * out_lanes)
        w_out_t = jnp.transpose(w_out).astype(matmul_dtype)
        operands.append(jnp.pad(w_out_t, ((0, 0), (0, out_pad - output_dim))))
        operands.append(jnp.pad(params['out_b'].reshape(1, -1).astype(jnp.float32),
                                ((0, 0), (0, out_pad - output_dim))))

    return {'operands': operands,
            'num_hidden': len(params['hidden_w']),
            'output_dim': output_dim,
            'out_pad': out_pad,
            'slim': slim,
            'hidden_sum': hidden_sum,
            'matmul_dtype': matmul_dtype}


def _vmem_capacity_bytes(default=64 * 1024 * 1024):
    """Physical VMEM of the current generation; conservative 64 MiB fallback."""
    try:
        info = pltpu.get_tpu_info()
        cap = int(getattr(info, 'vmem_capacity_bytes', 0) or 0)
        if cap > 0:
            return cap
    except Exception:
        pass
    return default


def _choose_tile_n(n, g, x_itemsize, mm_itemsize, out_cols_vmem, hidden_sum,
                   param_bytes, vmem_cap):
    """Largest row tile whose double-buffered x/out blocks plus in-kernel temporaries
    fit a generation-aware VMEM budget, capped so the grid has >= 2 tiles."""
    if vmem_cap <= 64 * 1024 * 1024:          # v7x-class (64 MiB per TensorCore)
        budget, max_tile = vmem_cap // 2, 1024
    else:                                      # v5e / v6e (128 MiB)
        budget, max_tile = int(vmem_cap * 0.70), 2048
    budget = max(budget - 2 * param_bytes - (2 << 20), 4 << 20)

    per_row = (g * (2 * x_itemsize + mm_itemsize + 4)   # 2x streamed x tile + cast/log temp
               + 2 * out_cols_vmem * 4                  # double-buffered (lane-padded) out
               + 8 * hidden_sum)                        # hidden activations (f32, ~2 live)
    align = 128 if n >= 128 else 8             # 128-aligned M keeps v5e MXU fully fed
    t = max_tile
    while t > align and t * per_row > budget:
        t //= 2
    t = max(t, align)

    # Keep both TensorCores fed on multi-TC chips; never tile past the padded N.
    half = -(-((n + 1) // 2) // align) * align
    n_aligned = -(-n // align) * align
    t = min(t, max(half, align), max(n_aligned, align))
    return t


_PARAM_SINGLE_BUFFER_OK = None   # cache: does this JAX accept pl.Buffered(1) specs?


def encode_nonempty_droplet_logit_prob(x, prepared, *, input_dim,
                                       input_transform=None, tile_n=None,
                                       x_dtype=None):
    """JAX/Pallas equivalent of EncodeNonEmptyDropletLogitProb.forward(x, chi_ambient);
    chi_ambient is folded into the prepared layer-0 bias."""
    global _PARAM_SINGLE_BUFFER_OK
    G = input_dim
    x2 = x.reshape(-1, G)
    if x_dtype is not None and x2.dtype != jnp.dtype(x_dtype):
        # e.g. bf16 streaming: halves HBM x traffic (exact for integer counts <= 256).
        x2 = x2.astype(x_dtype)
    n = x2.shape[0]

    ops = prepared['operands']
    mm_dtype = prepared['matmul_dtype']
    mm_itemsize = jnp.dtype(mm_dtype).itemsize
    slim = prepared['slim']
    out_pad = prepared['out_pad']
    out_cols_vmem = 128 if slim else out_pad   # VMEM lane-pads a width-1 block to 128
    param_bytes = sum(int(p.size) * p.dtype.itemsize for p in ops)
    vmem_cap = _vmem_capacity_bytes()

    if tile_n is None:
        tile_n = _choose_tile_n(n, G, x2.dtype.itemsize, mm_itemsize,
                                out_cols_vmem, prepared['hidden_sum'],
                                param_bytes, vmem_cap)
    num_tiles = -(-n // tile_n)
    n_pad = num_tiles * tile_n
    if n_pad != n:
        x2 = jnp.pad(x2, ((0, n_pad - n), (0, 0)))

    kernel = _make_kernel(prepared['num_hidden'], input_transform, mm_dtype, slim)

    x_spec = pl.BlockSpec((tile_n, G), lambda i: (i, 0))
    out_spec = pl.BlockSpec((tile_n, out_pad), lambda i: (i, 0))
    out_shape = jax.ShapeDtypeStruct((n_pad, out_pad), jnp.float32)

    # VMEM limit: double-buffered x/out tiles + params + in-kernel temporaries,
    # clamped to 80% of this generation's physical VMEM (compiler scratch headroom).
    est = (2 * (tile_n * G * x2.dtype.itemsize + tile_n * out_cols_vmem * 4)
           + 2 * param_bytes
           + tile_n * (G * (4 + mm_itemsize) + 8 * prepared['hidden_sum'])
           + (2 << 20))
    vmem_limit = int(min(max(est, 16 << 20), int(0.8 * vmem_cap)))

    cparams = pltpu.CompilerParams(dimension_semantics=("parallel",),
                                   vmem_limit_bytes=vmem_limit)

    attempts = ([True, False] if _PARAM_SINGLE_BUFFER_OK is None
                else [bool(_PARAM_SINGLE_BUFFER_OK)])
    out = None
    last_err = None
    for single in attempts:
        try:
            if single:
                # Weights/biases have a constant index_map -> one resident VMEM copy.
                param_specs = [pl.BlockSpec(p.shape, lambda i: (0, 0),
                                            pipeline_mode=pl.Buffered(1))
                               for p in ops]
            else:
                param_specs = [pl.BlockSpec(p.shape, lambda i: (0, 0)) for p in ops]
            out = jax.block_until_ready(pl.pallas_call(
                kernel,
                grid=(num_tiles,),
                in_specs=[x_spec] + param_specs,
                out_specs=out_spec,
                out_shape=out_shape,
                compiler_params=cparams,
            )(x2, *ops))
            _PARAM_SINGLE_BUFFER_OK = single
            break
        except Exception as e:          # fall back to default double-buffered params
            last_err = e
    if out is None:
        raise last_err

    out = out[:n]
    if prepared['output_dim'] == 1:
        return out[:, 0]                # .squeeze(-1) in torch
    return out[:, :prepared['output_dim']]


def _reference(x, chi_ambient, params, *, input_dim, input_transform=None):
    """Plain-JAX reference (concat form), for a sanity check."""
    x2 = x.reshape(-1, input_dim).astype(jnp.float32)
    counts = jnp.sum(x2, axis=-1, keepdims=True)
    log_sum = jnp.log1p(counts)
    if input_transform == 'log':
        xt = jnp.log1p(x2)
    elif input_transform == 'normalize':
        xt = x2 / counts
    else:
        xt = x2
    h = jnp.concatenate([log_sum, xt, xt - chi_ambient.reshape(1, -1)], axis=-1)
    for w, b in zip(params['hidden_w'], params['hidden_b']):
        h = jax.nn.softplus(h @ w.T + b)
    return (h @ params['out_w'].T + params['out_b'])[:, 0]


if __name__ == "__main__":
    input_dim = 16
    hidden_dims = [32, 16]
    output_dim = 1
    log_count_crossover = 5.0

    key = jax.random.PRNGKey(0)
    kp, kx, kc = jax.random.split(key, 3)

    params = init_params(kp, input_dim, hidden_dims, output_dim, log_count_crossover)

    # x: gene expression counts, shape (2, 4, 16) -> reshaped to (8, 16) inside.
    x = jnp.floor(jax.random.uniform(kx, (2, 4, input_dim), jnp.float32, 0.0, 6.0)) + 1.0
    # chi_ambient: ambient RNA profile over genes, shape (16,), sums to 1.
    chi_raw = jax.random.uniform(kc, (input_dim,), jnp.float32, 0.1, 1.0)
    chi_ambient = chi_raw / jnp.sum(chi_raw)

    # ---- faithful f32 path ('normalize' transform) vs. plain-JAX reference ----
    ref = _reference(x, chi_ambient, params, input_dim=input_dim,
                     input_transform='normalize')
    prep_f32 = prepare_params(params, chi_ambient, input_dim=input_dim,
                              matmul_dtype=jnp.float32)
    out = jax.block_until_ready(encode_nonempty_droplet_logit_prob(
        x, prep_f32, input_dim=input_dim, input_transform='normalize'))
    assert out.shape == (8,)
    assert jnp.allclose(out, ref, atol=1e-4, rtol=1e-4), (out, ref)

    # ---- default path: bf16 weights + bf16-streamed x (halves HBM traffic) ----
    prep_bf16 = prepare_params(params, chi_ambient, input_dim=input_dim)  # bf16 default
    out_bf16 = jax.block_until_ready(encode_nonempty_droplet_logit_prob(
        x, prep_bf16, input_dim=input_dim, input_transform='normalize',
        x_dtype=jnp.bfloat16))
    assert out_bf16.shape == (8,)
    assert bool(jnp.all(jnp.isfinite(out_bf16)))
    assert jnp.allclose(out_bf16, ref, atol=1.0, rtol=1e-1), (out_bf16, ref)

    # ---- 'log' transform branch, faithful f32 ----
    ref_log = _reference(x, chi_ambient, params, input_dim=input_dim,
                         input_transform='log')
    out_log = jax.block_until_ready(encode_nonempty_droplet_logit_prob(
        x, prep_f32, input_dim=input_dim, input_transform='log'))
    assert jnp.allclose(out_log, ref_log, atol=1e-4, rtol=1e-4), (out_log, ref_log)

    print("KERNEL_OK")
</pallas_src>

<mosaic_0001>
module attributes {stable_mosaic.version = 11 : i64} {
  func.func @kernel(%arg0: i32, %arg1: memref<8x16xf32, #tpu.memory_space<vmem>>, %arg2: memref<1x32xf32, #tpu.memory_space<vmem>>, %arg3: memref<16x32xf32, #tpu.memory_space<vmem>>, %arg4: memref<1x32xf32, #tpu.memory_space<vmem>>, %arg5: memref<32x16xf32, #tpu.memory_space<vmem>>, %arg6: memref<1x16xf32, #tpu.memory_space<vmem>>, %arg7: memref<1x16xf32, #tpu.memory_space<vmem>>, %arg8: memref<1x1xf32, #tpu.memory_space<vmem>>, %arg9: memref<8x1xf32, #tpu.memory_space<vmem>>) attributes {dimension_semantics = [#tpu.dimension_semantics<parallel>], iteration_bounds = array<i64: 1>, scalar_prefetch = 0 : i64, scratch_operands = 0 : i64, tpu.core_type = #tpu.core_type<tc>, window_params = [{transform_indices = @transform_0, window_bounds = array<i64: 8, 16>}, {pipeline_mode = #tpu.pipeline_mode<synchronous>, transform_indices = @transform_1, window_bounds = array<i64: 1, 32>}, {pipeline_mode = #tpu.pipeline_mode<synchronous>, transform_indices = @transform_2, window_bounds = array<i64: 16, 32>}, {pipeline_mode = #tpu.pipeline_mode<synchronous>, transform_indices = @transform_3, window_bounds = array<i64: 1, 32>}, {pipeline_mode = #tpu.pipeline_mode<synchronous>, transform_indices = @transform_4, window_bounds = array<i64: 32, 16>}, {pipeline_mode = #tpu.pipeline_mode<synchronous>, transform_indices = @transform_5, window_bounds = array<i64: 1, 16>}, {pipeline_mode = #tpu.pipeline_mode<synchronous>, transform_indices = @transform_6, window_bounds = array<i64: 1, 16>}, {pipeline_mode = #tpu.pipeline_mode<synchronous>, transform_indices = @transform_7, window_bounds = array<i64: 1, 1>}, {transform_indices = @transform_8, window_bounds = array<i64: 8, 1>}]} {
    %c0 = arith.constant 0 : index
    %c0_0 = arith.constant 0 : index
    %0 = vector.load %arg1[%c0, %c0_0] : memref<8x16xf32, #tpu.memory_space<vmem>>, vector<8x16xf32>
    %cst = arith.constant dense<0.000000e+00> : vector<8xf32>
    %1 = vector.multi_reduction <add>, %0, %cst [1] : vector<8x16xf32> to vector<8xf32>
    %2 = vector.shape_cast %1 : vector<8xf32> to vector<8x1xf32>
    %3 = math.log1p %2 : vector<8x1xf32>
    %c0_1 = arith.constant 0 : index
    %c0_2 = arith.constant 0 : index
    %4 = vector.load %arg3[%c0_1, %c0_2] : memref<16x32xf32, #tpu.memory_space<vmem>>, vector<16x32xf32>
    %cst_3 = arith.constant dense<0.000000e+00> : vector<8x32xf32>
    %5 = tpu.matmul %0, %4, %cst_3 {dimension_numbers = #tpu.dot_dimension_numbers<[1], [0], [0], [1], [0, 0, 1, 1], [], []>} : vector<8x16xf32>, vector<16x32xf32>, vector<8x32xf32> -> vector<8x32xf32>
    %cst_4 = arith.constant 0.000000e+00 : f32
    %6 = vector.broadcast %cst_4 : f32 to vector<8x1xf32>
    %7 = arith.cmpf oeq, %2, %6 : vector<8x1xf32>
    %cst_5 = arith.constant 1.000000e+00 : f32
    %8 = vector.broadcast %cst_5 : f32 to vector<8x1xf32>
    %9 = arith.select %7, %8, %2 : vector<8x1xi1>, vector<8x1xf32>
    %10 = tpu.reciprocal %9 : vector<8x1xf32> -> vector<8x1xf32>
    %11 = vector.broadcast %10 : vector<8x1xf32> to vector<8x32xf32>
    %12 = arith.mulf %5, %11 : vector<8x32xf32>
    %c0_6 = arith.constant 0 : index
    %c0_7 = arith.constant 0 : index
    %13 = vector.load %arg2[%c0_6, %c0_7] : memref<1x32xf32, #tpu.memory_space<vmem>>, vector<1x32xf32>
    %14 = vector.broadcast %3 : vector<8x1xf32> to vector<8x32xf32>
    %15 = vector.broadcast %13 : vector<1x32xf32> to vector<8x32xf32>
    %16 = arith.mulf %14, %15 : vector<8x32xf32>
    %17 = arith.addf %12, %16 : vector<8x32xf32>
    %c0_8 = arith.constant 0 : index
    %c0_9 = arith.constant 0 : index
    %18 = vector.load %arg4[%c0_8, %c0_9] : memref<1x32xf32, #tpu.memory_space<vmem>>, vector<1x32xf32>
    %19 = vector.broadcast %18 : vector<1x32xf32> to vector<8x32xf32>
    %20 = arith.addf %17, %19 : vector<8x32xf32>
    %cst_10 = arith.constant 2.000000e+01 : f32
    %21 = vector.broadcast %cst_10 : f32 to vector<8x32xf32>
    %22 = arith.cmpf ogt, %20, %21 : vector<8x32xf32>
    %cst_11 = arith.constant 2.000000e+01 : f32
    %23 = vector.broadcast %cst_11 : f32 to vector<8x32xf32>
    %24 = arith.minimumf %20, %23 : vector<8x32xf32>
    %25 = math.exp %24 : vector<8x32xf32>
    %26 = math.log1p %25 : vector<8x32xf32>
    %27 = arith.select %22, %20, %26 : vector<8x32xi1>, vector<8x32xf32>
    %c0_12 = arith.constant 0 : index
    %c0_13 = arith.constant 0 : index
    %28 = vector.load %arg5[%c0_12, %c0_13] : memref<32x16xf32, #tpu.memory_space<vmem>>, vector<32x16xf32>
    %c0_14 = arith.constant 0 : index
    %c0_15 = arith.constant 0 : index
    %29 = vector.load %arg6[%c0_14, %c0_15] : memref<1x16xf32, #tpu.memory_space<vmem>>, vector<1x16xf32>
    %cst_16 = arith.constant dense<0.000000e+00> : vector<8x16xf32>
    %30 = tpu.matmul %27, %28, %cst_16 {dimension_numbers = #tpu.dot_dimension_numbers<[1], [0], [0], [1], [0, 0, 1, 1], [], []>} : vector<8x32xf32>, vector<32x16xf32>, vector<8x16xf32> -> vector<8x16xf32>
    %31 = vector.broadcast %29 : vector<1x16xf32> to vector<8x16xf32>
    %32 = arith.addf %30, %31 : vector<8x16xf32>
    %cst_17 = arith.constant 2.000000e+01 : f32
    %33 = vector.broadcast %cst_17 : f32 to vector<8x16xf32>
    %34 = arith.cmpf ogt, %32, %33 : vector<8x16xf32>
    %cst_18 = arith.constant 2.000000e+01 : f32
    %35 = vector.broadcast %cst_18 : f32 to vector<8x16xf32>
    %36 = arith.minimumf %32, %35 : vector<8x16xf32>
    %37 = math.exp %36 : vector<8x16xf32>
    %38 = math.log1p %37 : vector<8x16xf32>
    %39 = arith.select %34, %32, %38 : vector<8x16xi1>, vector<8x16xf32>
    %c0_19 = arith.constant 0 : index
    %c0_20 = arith.constant 0 : index
    %40 = vector.load %arg7[%c0_19, %c0_20] : memref<1x16xf32, #tpu.memory_space<vmem>>, vector<1x16xf32>
    %c0_21 = arith.constant 0 : index
    %c0_22 = arith.constant 0 : index
    %41 = vector.load %arg8[%c0_21, %c0_22] : memref<1x1xf32, #tpu.memory_space<vmem>>, vector<1x1xf32>
    %42 = vector.broadcast %40 : vector<1x16xf32> to vector<8x16xf32>
    %43 = arith.mulf %39, %42 : vector<8x16xf32>
    %cst_23 = arith.constant dense<0.000000e+00> : vector<8xf32>
    %44 = vector.multi_reduction <add>, %43, %cst_23 [1] : vector<8x16xf32> to vector<8xf32>
    %45 = vector.shape_cast %44 : vector<8xf32> to vector<8x1xf32>
    %46 = vector.broadcast %41 : vector<1x1xf32> to vector<8x1xf32>
    %47 = arith.addf %45, %46 : vector<8x1xf32>
    %c0_24 = arith.constant 0 : index
    %c0_25 = arith.constant 0 : index
    %48 = vector.load %arg9[%c0_24, %c0_25] : memref<8x1xf32, #tpu.memory_space<vmem>>, vector<8x1xf32>
    tpu.vector_store %arg9[%c0_24, %c0_25], %47 {strides = array<i32>} : memref<8x1xf32, #tpu.memory_space<vmem>>, vector<8x1xf32>,
    return
  }
  func.func @transform_0(%arg0: i32) -> (i32, i32) {
    %c0_i32 = arith.constant 0 : i32
    %c0_i32_0 = arith.constant 0 : i32
    return %arg0, %c0_i32 : i32, i32
  }
  func.func @transform_1(%arg0: i32) -> (i32, i32) {
    %c0_i32 = arith.constant 0 : i32
    %c0_i32_0 = arith.constant 0 : i32
    %c0_i32_1 = arith.constant 0 : i32
    return %c0_i32, %c0_i32_0 : i32, i32
  }
  func.func @transform_2(%arg0: i32) -> (i32, i32) {
    %c0_i32 = arith.constant 0 : i32
    %c0_i32_0 = arith.constant 0 : i32
    %c0_i32_1 = arith.constant 0 : i32
    return %c0_i32, %c0_i32_0 : i32, i32
  }
  func.func @transform_3(%arg0: i32) -> (i32, i32) {
    %c0_i32 = arith.constant 0 : i32
    %c0_i32_0 = arith.constant 0 : i32
    %c0_i32_1 = arith.constant 0 : i32
    return %c0_i32, %c0_i32_0 : i32, i32
  }
  func.func @transform_4(%arg0: i32) -> (i32, i32) {
    %c0_i32 = arith.constant 0 : i32
    %c0_i32_0 = arith.constant 0 : i32
    %c0_i32_1 = arith.constant 0 : i32
    return %c0_i32, %c0_i32_0 : i32, i32
  }
  func.func @transform_5(%arg0: i32) -> (i32, i32) {
    %c0_i32 = arith.constant 0 : i32
    %c0_i32_0 = arith.constant 0 : i32
    %c0_i32_1 = arith.constant 0 : i32
    return %c0_i32, %c0_i32_0 : i32, i32
  }
  func.func @transform_6(%arg0: i32) -> (i32, i32) {
    %c0_i32 = arith.constant 0 : i32
    %c0_i32_0 = arith.constant 0 : i32
    %c0_i32_1 = arith.constant 0 : i32
    return %c0_i32, %c0_i32_0 : i32, i32
  }
  func.func @transform_7(%arg0: i32) -> (i32, i32) {
    %c0_i32 = arith.constant 0 : i32
    %c0_i32_0 = arith.constant 0 : i32
    %c0_i32_1 = arith.constant 0 : i32
    return %c0_i32, %c0_i32_0 : i32, i32
  }
  func.func @transform_8(%arg0: i32) -> (i32, i32) {
    %c0_i32 = arith.constant 0 : i32
    %c0_i32_0 = arith.constant 0 : i32
    return %arg0, %c0_i32 : i32, i32
  }
}

module attributes {stable_mosaic.version = 11 : i64} {
  func.func @kernel(%arg0: i32, %arg1: memref<8x16xf32, #tpu.memory_space<vmem>>, %arg2: memref<1x32xf32, #tpu.memory_space<vmem>>, %arg3: memref<16x32xf32, #tpu.memory_space<vmem>>, %arg4: memref<1x32xf32, #tpu.memory_space<vmem>>, %arg5: memref<32x16xf32, #tpu.memory_space<vmem>>, %arg6: memref<1x16xf32, #tpu.memory_space<vmem>>, %arg7: memref<1x16xf32, #tpu.memory_space<vmem>>, %arg8: memref<1x1xf32, #tpu.memory_space<vmem>>, %arg9: memref<8x1xf32, #tpu.memory_space<vmem>>) attributes {dimension_semantics = [#tpu.dimension_semantics<parallel>], iteration_bounds = array<i64: 1>, scalar_prefetch = 0 : i64, scratch_operands = 0 : i64, tpu.core_type = #tpu.core_type<tc>, window_params = [{transform_indices = @transform_0, window_bounds = array<i64: 8, 16>}, {pipeline_mode = #tpu.pipeline_mode<synchronous>, transform_indices = @transform_1, window_bounds = array<i64: 1, 32>}, {pipeline_mode = #tpu.pipeline_mode<synchronous>, transform_indices = @transform_2, window_bounds = array<i64: 16, 32>}, {pipeline_mode = #tpu.pipeline_mode<synchronous>, transform_indices = @transform_3, window_bounds = array<i64: 1, 32>}, {pipeline_mode = #tpu.pipeline_mode<synchronous>, transform_indices = @transform_4, window_bounds = array<i64: 32, 16>}, {pipeline_mode = #tpu.pipeline_mode<synchronous>, transform_indices = @transform_5, window_bounds = array<i64: 1, 16>}, {pipeline_mode = #tpu.pipeline_mode<synchronous>, transform_indices = @transform_6, window_bounds = array<i64: 1, 16>}, {pipeline_mode = #tpu.pipeline_mode<synchronous>, transform_indices = @transform_7, window_bounds = array<i64: 1, 1>}, {transform_indices = @transform_8, window_bounds = array<i64: 8, 1>}]} {
    %c0 = arith.constant 0 : index
    %c0_0 = arith.constant 0 : index
    %0 = vector.load %arg1[%c0, %c0_0] : memref<8x16xf32, #tpu.memory_space<vmem>>, vector<8x16xf32>
    %cst = arith.constant dense<0.000000e+00> : vector<8xf32>
    %1 = vector.multi_reduction <add>, %0, %cst [1] : vector<8x16xf32> to vector<8xf32>
    %2 = vector.shape_cast %1 : vector<8xf32> to vector<8x1xf32>
    %3 = math.log1p %2 : vector<8x1xf32>
    %c0_1 = arith.constant 0 : index
    %c0_2 = arith.constant 0 : index
    %4 = vector.load %arg3[%c0_1, %c0_2] : memref<16x32xf32, #tpu.memory_space<vmem>>, vector<16x32xf32>
    %cst_3 = arith.constant dense<0.000000e+00> : vector<8x32xf32>
    %5 = tpu.matmul %0, %4, %cst_3 {dimension_numbers = #tpu.dot_dimension_numbers<[1], [0], [0], [1], [0, 0, 1, 1], [], []>} : vector<8x16xf32>, vector<16x32xf32>, vector<8x32xf32> -> vector<8x32xf32>
    %cst_4 = arith.constant 0.000000e+00 : f32
    %6 = vector.broadcast %cst_4 : f32 to vector<8x1xf32>
    %7 = arith.cmpf oeq, %2, %6 : vector<8x1xf32>
    %cst_5 = arith.constant 1.000000e+00 : f32
    %8 = vector.broadcast %cst_5 : f32 to vector<8x1xf32>
    %9 = arith.select %7, %8, %2 : vector<8x1xi1>, vector<8x1xf32>
    %10 = tpu.reciprocal %9 : vector<8x1xf32> -> vector<8x1xf32>
    %11 = vector.broadcast %10 : vector<8x1xf32> to vector<8x32xf32>
    %12 = arith.mulf %5, %11 : vector<8x32xf32>
    %c0_6 = arith.constant 0 : index
    %c0_7 = arith.constant 0 : index
    %13 = vector.load %arg2[%c0_6, %c0_7] : memref<1x32xf32, #tpu.memory_space<vmem>>, vector<1x32xf32>
    %14 = vector.broadcast %3 : vector<8x1xf32> to vector<8x32xf32>
    %15 = vector.broadcast %13 : vector<1x32xf32> to vector<8x32xf32>
    %16 = arith.mulf %14, %15 : vector<8x32xf32>
    %17 = arith.addf %12, %16 : vector<8x32xf32>
    %c0_8 = arith.constant 0 : index
    %c0_9 = arith.constant 0 : index
    %18 = vector.load %arg4[%c0_8, %c0_9] : memref<1x32xf32, #tpu.memory_space<vmem>>, vector<1x32xf32>
    %19 = vector.broadcast %18 : vector<1x32xf32> to vector<8x32xf32>
    %20 = arith.addf %17, %19 : vector<8x32xf32>
    %cst_10 = arith.constant 2.000000e+01 : f32
    %21 = vector.broadcast %cst_10 : f32 to vector<8x32xf32>
    %22 = arith.cmpf ogt, %20, %21 : vector<8x32xf32>
    %cst_11 = arith.constant 2.000000e+01 : f32
    %23 = vector.broadcast %cst_11 : f32 to vector<8x32xf32>
    %24 = arith.minimumf %20, %23 : vector<8x32xf32>
    %25 = math.exp %24 : vector<8x32xf32>
    %26 = math.log1p %25 : vector<8x32xf32>
    %27 = arith.select %22, %20, %26 : vector<8x32xi1>, vector<8x32xf32>
    %c0_12 = arith.constant 0 : index
    %c0_13 = arith.constant 0 : index
    %28 = vector.load %arg5[%c0_12, %c0_13] : memref<32x16xf32, #tpu.memory_space<vmem>>, vector<32x16xf32>
    %c0_14 = arith.constant 0 : index
    %c0_15 = arith.constant 0 : index
    %29 = vector.load %arg6[%c0_14, %c0_15] : memref<1x16xf32, #tpu.memory_space<vmem>>, vector<1x16xf32>
    %cst_16 = arith.constant dense<0.000000e+00> : vector<8x16xf32>
    %30 = tpu.matmul %27, %28, %cst_16 {dimension_numbers = #tpu.dot_dimension_numbers<[1], [0], [0], [1], [0, 0, 1, 1], [], []>} : vector<8x32xf32>, vector<32x16xf32>, vector<8x16xf32> -> vector<8x16xf32>
    %31 = vector.broadcast %29 : vector<1x16xf32> to vector<8x16xf32>
    %32 = arith.addf %30, %31 : vector<8x16xf32>
    %cst_17 = arith.constant 2.000000e+01 : f32
    %33 = vector.broadcast %cst_17 : f32 to vector<8x16xf32>
    %34 = arith.cmpf ogt, %32, %33 : vector<8x16xf32>
    %cst_18 = arith.constant 2.000000e+01 : f32
    %35 = vector.broadcast %cst_18 : f32 to vector<8x16xf32>
    %36 = arith.minimumf %32, %35 : vector<8x16xf32>
    %37 = math.exp %36 : vector<8x16xf32>
    %38 = math.log1p %37 : vector<8x16xf32>
    %39 = arith.select %34, %32, %38 : vector<8x16xi1>, vector<8x16xf32>
    %c0_19 = arith.constant 0 : index
    %c0_20 = arith.constant 0 : index
    %40 = vector.load %arg7[%c0_19, %c0_20] : memref<1x16xf32, #tpu.memory_space<vmem>>, vector<1x16xf32>
    %c0_21 = arith.constant 0 : index
    %c0_22 = arith.constant 0 : index
    %41 = vector.load %arg8[%c0_21, %c0_22] : memref<1x1xf32, #tpu.memory_space<vmem>>, vector<1x1xf32>
    %42 = vector.broadcast %40 : vector<1x16xf32> to vector<8x16xf32>
    %43 = arith.mulf %39, %42 : vector<8x16xf32>
    %cst_23 = arith.constant dense<0.000000e+00> : vector<8xf32>
    %44 = vector.multi_reduction <add>, %43, %cst_23 [1] : vector<8x16xf32> to vector<8xf32>
    %45 = vector.shape_cast %44 : vector<8xf32> to vector<8x1xf32>
    %46 = vector.broadcast %41 : vector<1x1xf32> to vector<8x1xf32>
    %47 = arith.addf %45, %46 : vector<8x1xf32>
    %c0_24 = arith.constant 0 : index
    %c0_25 = arith.constant 0 : index
    %48 = vector.load %arg9[%c0_24, %c0_25] : memref<8x1xf32, #tpu.memory_space<vmem>>, vector<8x1xf32>
    tpu.vector_store %arg9[%c0_24, %c0_25], %47 {strides = array<i32>} : memref<8x1xf32, #tpu.memory_space<vmem>>, vector<8x1xf32>,
    return
  }
  func.func @transform_0(%arg0: i32) -> (i32, i32) {
    %c0_i32 = arith.constant 0 : i32
    %c0_i32_0 = arith.constant 0 : i32
    return %arg0, %c0_i32 : i32, i32
  }
  func.func @transform_1(%arg0: i32) -> (i32, i32) {
    %c0_i32 = arith.constant 0 : i32
    %c0_i32_0 = arith.constant 0 : i32
    %c0_i32_1 = arith.constant 0 : i32
    return %c0_i32, %c0_i32_0 : i32, i32
  }
  func.func @transform_2(%arg0: i32) -> (i32, i32) {
    %c0_i32 = arith.constant 0 : i32
    %c0_i32_0 = arith.constant 0 : i32
    %c0_i32_1 = arith.constant 0 : i32
    return %c0_i32, %c0_i32_0 : i32, i32
  }
  func.func @transform_3(%arg0: i32) -> (i32, i32) {
    %c0_i32 = arith.constant 0 : i32
    %c0_i32_0 = arith.constant 0 : i32
    %c0_i32_1 = arith.constant 0 : i32
    return %c0_i32, %c0_i32_0 : i32, i32
  }
  func.func @transform_4(%arg0: i32) -> (i32, i32) {
    %c0_i32 = arith.constant 0 : i32
    %c0_i32_0 = arith.constant 0 : i32
    %c0_i32_1 = arith.constant 0 : i32
    return %c0_i32, %c0_i32_0 : i32, i32
  }
  func.func @transform_5(%arg0: i32) -> (i32, i32) {
    %c0_i32 = arith.constant 0 : i32
    %c0_i32_0 = arith.constant 0 : i32
    %c0_i32_1 = arith.constant 0 : i32
    return %c0_i32, %c0_i32_0 : i32, i32
  }
  func.func @transform_6(%arg0: i32) -> (i32, i32) {
    %c0_i32 = arith.constant 0 : i32
    %c0_i32_0 = arith.constant 0 : i32
    %c0_i32_1 = arith.constant 0 : i32
    return %c0_i32, %c0_i32_0 : i32, i32
  }
  func.func @transform_7(%arg0: i32) -> (i32, i32) {
    %c0_i32 = arith.constant 0 : i32
    %c0_i32_0 = arith.constant 0 : i32
    %c0_i32_1 = arith.constant 0 : i32
    return %c0_i32, %c0_i32_0 : i32, i32
  }
  func.func @transform_8(%arg0: i32) -> (i32, i32) {
    %c0_i32 = arith.constant 0 : i32
    %c0_i32_0 = arith.constant 0 : i32
    return %arg0, %c0_i32 : i32, i32
  }
}

</mosaic_0001>

<bundles_post_ra>
// kernel: tpu_custom_call.1
= control target key start
LH: loop header
LB: loop body
LE: loop exit
PB: predicated region body
PF: predicated region fallthrough
CT: control target
= control target key end

     0   :  { %v326_v0 = vmov 0.0   ;;  %vm327_vm0 = vmmov 0   ;;  %vm32_vm1 = vcmask 130048   ;;  %vm166_vm5 = vcmask 261120   ;;  %s415_s2 = inlined_call_operand.vmem [shape: f32[16,32], index: 2, kind: input, shape index: {}]   ;;  %s416_s0 = inlined_call_operand.vmem [shape: f32[8,16], index: 0, kind: input, shape index: {}]   ;;  %s417_s4 = inlined_call_operand.vmem [shape: f32[32,16], index: 4, kind: input, shape index: {}]   ;;  %s418_s1 = inlined_call_operand.vmem [shape: f32[1,32], index: 1, kind: input, shape index: {}]   ;;  %s419_s3 = inlined_call_operand.vmem [shape: f32[1,32], index: 3, kind: input, shape index: {}]   ;;  %s420_s7 = inlined_call_operand.<no memory space> [shape: f32[1,1], index: 7, kind: input, shape index: {}]   ;;  %s421_s5 = inlined_call_operand.vmem [shape: f32[1,16], index: 5, kind: input, shape index: {}]   ;;  %s422_s6 = inlined_call_operand.vmem [shape: f32[1,16], index: 6, kind: input, shape index: {}]   ;;  %s423_s8 = inlined_call_operand.vmem [shape: f32[8,1], index: 8, kind: output, shape index: {}]  }
   0x1   :  { %294 = vmatprep.subr.mxu0 %v326_v0  ;;  %v46_v1 = vld [vmem:[%s415_s2 + $0x8] sm:$0xff]  ;;  %v45_v2 = vld [vmem:[%s415_s2] sm:$0xff]  ;;  %298 = vmatprep.mubr.msk.f32.mxu0 %vm327_vm0, %v326_v0  ;;  %v158_v5 = vld [vmem:[%s417_s4 + $0x18] sm:$0xff]  ;;  %v13_v40 = vstv %s420_s7  ;;  %vm273_vm9 = vcmask 7168  }
   0x2   :  { %v31_v3 = vld [vmem:[%s416_s0] sm:$0xff]  ;;  %295 = vmatpush3.msra.mxu0 %v46_v1  ;;  %301 = vmatprep.subr.mxu1 %v326_v0  ;;  %v157_v6 = vld [vmem:[%s417_s4 + $0x10] sm:$0xff]  ;;  %v156_v7 = vld [vmem:[%s417_s4 + $0x8] sm:$0xff]  ;;  %14 = vst [vmem:[#allocation2] sm:$0x1] %v13_v40 }
   0x3   :  { %v33_v4 = vsel %vm32_vm1, %v31_v3, 0.0  ;;  %296 = vmatprep.subr.mxu0 %v326_v0  ;;  %309 = vmatprep.mubr.msk.f32.mxu1 %vm327_vm0, %v326_v0  ;;  %v155_v8 = vld [vmem:[%s417_s4] sm:$0xff] }
   0x4   :  { %34 = vadd.xlane.f32.xlu0 %v33_v4  ;;  %297 = vmatpush3.msra.mxu0 %v45_v2  ;;  %v280_v19 = vld [vmem:[%s418_s1] ss:$0 sm:$0xff] }
   0x5   :  { %299 = vmatmul.mubr.msk.f32.vlgmr.msra.gmra.mxu0 %vm32_vm1, %v31_v3  ;;  %302 = vmatpush3.msra.mxu1 %v158_v5  ;;  %v281_v24 = vld [vmem:[%s419_s3] ss:$0 sm:$0xff] }
   0x6   :  { %303 = vmatprep.subr.mxu1 %v326_v0  ;;  %v282_v41 = vld [vmem:[%s421_s5] ss:$0 sm:$0xff] }
   0x7   :  { %304 = vmatpush3.msra.mxu1 %v157_v6  ;;  %v284_v55 = vld [vmem:[%s422_s6] ss:$0 sm:$0xff] }
   0x8   :  { %305 = vmatprep.subr.mxu1 %v326_v0 }
   0x9   :  { %306 = vmatpush3.msra.mxu1 %v156_v7  ;;  %v285_v60 = vld [vmem:[#allocation2] ss:$0 sm:$0xff] }
   0xa   :  { %307 = vmatprep.subr.mxu1 %v326_v0 }
   0xb   :  { %308 = vmatpush3.msra.mxu1 %v155_v8 }
  0x8d   :  { %v35_v9 = vpop.xlane.xlu0 %34 }
  0x8e   :  { %v36_v10 = vadd.f32 1.0, %v35_v9  ;;  %vm120_vm2 = vcmp.eq.f32.partialorder %v35_v9, 0.0  ;;  %v39_v12 = vmul.f32 -0.5, %v35_v9  ;;  %v42_v15 = vand.u32 2147483647, %v35_v9 }
  0x8f   :  { %v121_v11 = vsel %vm120_vm2, 1.0, %v35_v9 }
  0x90   :  { %314 = vlog2.f32 %v36_v10  ;;  %v40_v13 = vadd.f32 1.0, %v39_v12  ;;  %vm43_vm3 = vcmp.lt.f32.partialorder %v42_v15, 0.0004427343 }
  0x91   :  { %316 = vrcp.f32 %v121_v11 }
  0x92   :  { %v41_v17 = vmul.f32 %v40_v13, %v35_v9 }
  0x9d   :  { %v315_v14 = vpop.eup %314 }
  0x9e   :  { %v38_v16 = vmul.f32 0.6931472, %v315_v14  ;;  %v317_v20 = vpop.eup %316 }
  0xa0   :  { %v44_v18 = vsel %vm43_vm3, %v41_v17, %v38_v16 }
  0xa1   :  { %v131_v23 = vmul.f32 %v280_v19, %v44_v18 }
  0xc5   :  { %v116_v21 = vpop.f32.mrf.mxu0 }
  0xc6   :  { %v123_v22 = vmul.f32 %v317_v20, %v116_v21 }
  0xc7   :  { %v300_v25 = vpop.f32.mrf.mxu0 }
  0xc8   :  { %v132_v26 = vadd.f32 %v131_v23, %v123_v22 }
  0xca   :  { %v140_v27 = vadd.f32 %v281_v24, %v132_v26 }
  0xcc   :  { %v142_v28 = vmin.f32 %v140_v27, 20.0  ;;  %vm141_vm6 = vcmp.gt.f32.partialorder %v140_v27, 20.0 }
  0xce   :  { %v143_v29 = vmul.f32 1.442695, %v142_v28 }
  0xd0   :  { %318 = vpow2.f32 %v143_v29 }
  0xdd   :  { %v319_v30 = vpop.eup %318 }
  0xde   :  { %v145_v31 = vadd.f32 1.0, %v319_v30  ;;  %v148_v32 = vmul.f32 -0.5, %v319_v30  ;;  %v151_v34 = vand.u32 2147483647, %v319_v30 }
  0xe0   :  { %320 = vlog2.f32 %v145_v31  ;;  %v149_v33 = vadd.f32 1.0, %v148_v32  ;;  %vm152_vm4 = vcmp.lt.f32.partialorder %v151_v34, 0.0004427343 }
  0xe2   :  { %v150_v37 = vmul.f32 %v319_v30, %v149_v33 }
  0xed   :  { %v321_v35 = vpop.eup %320 }
  0xee   :  { %v147_v36 = vmul.f32 0.6931472, %v321_v35 }
  0xf0   :  { %v153_v38 = vsel %vm152_vm4, %v150_v37, %v147_v36 }
  0xf1   :  { %v154_v39 = vsel %vm141_vm6, %v140_v27, %v153_v38 }
  0xf2   :  { %310 = vmatmul.mubr.msk.f32.vlgmr.msra.gmra.mxu1 %vm166_vm5, %v154_v39 }
 0x1b2   :  { %v236_v42 = vpop.f32.mrf.mxu1 }
 0x1b3   :  { %v237_v43 = vadd.f32 %v282_v41, %v236_v42 }
 0x1b4   :  { %v311_v44 = vpop.f32.mrf.mxu1 }
 0x1b5   :  { %v241_v45 = vmin.f32 %v237_v43, 20.0  ;;  %vm240_vm8 = vcmp.gt.f32.partialorder %v237_v43, 20.0 }
 0x1b7   :  { %v242_v46 = vmul.f32 1.442695, %v241_v45 }
 0x1b9   :  { %322 = vpow2.f32 %v242_v46 }
 0x1c6   :  { %v323_v47 = vpop.eup %322 }
 0x1c7   :  { %v244_v48 = vadd.f32 1.0, %v323_v47  ;;  %v247_v49 = vmul.f32 -0.5, %v323_v47  ;;  %v250_v51 = vand.u32 2147483647, %v323_v47 }
 0x1c9   :  { %324 = vlog2.f32 %v244_v48  ;;  %v248_v50 = vadd.f32 1.0, %v247_v49  ;;  %vm251_vm7 = vcmp.lt.f32.partialorder %v250_v51, 0.0004427343 }
 0x1cb   :  { %v249_v54 = vmul.f32 %v323_v47, %v248_v50 }
 0x1d6   :  { %v325_v52 = vpop.eup %324 }
 0x1d7   :  { %v246_v53 = vmul.f32 0.6931472, %v325_v52 }
 0x1d9   :  { %v252_v56 = vsel %vm251_vm7, %v249_v54, %v246_v53 }
 0x1da   :  { %v253_v57 = vsel %vm240_vm8, %v237_v43, %v252_v56 }
 0x1db   :  { %v262_v58 = vmul.f32 %v284_v55, %v253_v57 }
 0x1dd   :  { %v263_v59 = vsel %vm32_vm1, %v262_v58, 0.0 }
 0x1de   :  { %264 = vadd.xlane.f32.xlu0 %v263_v59 }
 0x267   :  { %v265_v61 = vpop.xlane.xlu0 %264 }
 0x268   :  { %v272_v62 = vadd.f32 %v285_v60, %v265_v61 }
 0x26a   :  { %274 = vst.msk [vmem:[%s423_s8] sm:$0xff] %vm273_vm9, %v272_v62 }

// kernel: tpu_custom_call.1
= control target key start
LH: loop header
LB: loop body
LE: loop exit
PB: predicated region body
PF: predicated region fallthrough
CT: control target
= control target key end

     0   :  { %v326_v0 = vmov 0.0   ;;  %vm327_vm0 = vmmov 0   ;;  %vm32_vm1 = vcmask 130048   ;;  %vm166_vm5 = vcmask 261120   ;;  %s415_s2 = inlined_call_operand.vmem [shape: f32[16,32], index: 2, kind: input, shape index: {}]   ;;  %s416_s0 = inlined_call_operand.vmem [shape: f32[8,16], index: 0, kind: input, shape index: {}]   ;;  %s417_s4 = inlined_call_operand.vmem [shape: f32[32,16], index: 4, kind: input, shape index: {}]   ;;  %s418_s1 = inlined_call_operand.vmem [shape: f32[1,32], index: 1, kind: input, shape index: {}]   ;;  %s419_s3 = inlined_call_operand.vmem [shape: f32[1,32], index: 3, kind: input, shape index: {}]   ;;  %s420_s7 = inlined_call_operand.<no memory space> [shape: f32[1,1], index: 7, kind: input, shape index: {}]   ;;  %s421_s5 = inlined_call_operand.vmem [shape: f32[1,16], index: 5, kind: input, shape index: {}]   ;;  %s422_s6 = inlined_call_operand.vmem [shape: f32[1,16], index: 6, kind: input, shape index: {}]   ;;  %s423_s8 = inlined_call_operand.vmem [shape: f32[8,1], index: 8, kind: output, shape index: {}]  }
   0x1   :  { %294 = vmatprep.subr.mxu0 %v326_v0  ;;  %v46_v1 = vld [vmem:[%s415_s2 + $0x8] sm:$0xff]  ;;  %v45_v2 = vld [vmem:[%s415_s2] sm:$0xff]  ;;  %298 = vmatprep.mubr.msk.f32.mxu0 %vm327_vm0, %v326_v0  ;;  %v158_v5 = vld [vmem:[%s417_s4 + $0x18] sm:$0xff]  ;;  %v13_v40 = vstv %s420_s7  ;;  %vm273_vm9 = vcmask 7168  }
   0x2   :  { %v31_v3 = vld [vmem:[%s416_s0] sm:$0xff]  ;;  %295 = vmatpush3.msra.mxu0 %v46_v1  ;;  %301 = vmatprep.subr.mxu1 %v326_v0  ;;  %v157_v6 = vld [vmem:[%s417_s4 + $0x10] sm:$0xff]  ;;  %v156_v7 = vld [vmem:[%s417_s4 + $0x8] sm:$0xff]  ;;  %14 = vst [vmem:[#allocation2] sm:$0x1] %v13_v40 }
   0x3   :  { %v33_v4 = vsel %vm32_vm1, %v31_v3, 0.0  ;;  %296 = vmatprep.subr.mxu0 %v326_v0  ;;  %309 = vmatprep.mubr.msk.f32.mxu1 %vm327_vm0, %v326_v0  ;;  %v155_v8 = vld [vmem:[%s417_s4] sm:$0xff] }
   0x4   :  { %34 = vadd.xlane.f32.xlu0 %v33_v4  ;;  %297 = vmatpush3.msra.mxu0 %v45_v2  ;;  %v280_v19 = vld [vmem:[%s418_s1] ss:$0 sm:$0xff] }
   0x5   :  { %299 = vmatmul.mubr.msk.f32.vlgmr.msra.gmra.mxu0 %vm32_vm1, %v31_v3  ;;  %302 = vmatpush3.msra.mxu1 %v158_v5  ;;  %v281_v24 = vld [vmem:[%s419_s3] ss:$0 sm:$0xff] }
   0x6   :  { %303 = vmatprep.subr.mxu1 %v326_v0  ;;  %v282_v41 = vld [vmem:[%s421_s5] ss:$0 sm:$0xff] }
   0x7   :  { %304 = vmatpush3.msra.mxu1 %v157_v6  ;;  %v284_v55 = vld [vmem:[%s422_s6] ss:$0 sm:$0xff] }
   0x8   :  { %305 = vmatprep.subr.mxu1 %v326_v0 }
   0x9   :  { %306 = vmatpush3.msra.mxu1 %v156_v7  ;;  %v285_v60 = vld [vmem:[#allocation2] ss:$0 sm:$0xff] }
   0xa   :  { %307 = vmatprep.subr.mxu1 %v326_v0 }
   0xb   :  { %308 = vmatpush3.msra.mxu1 %v155_v8 }
  0x8d   :  { %v35_v9 = vpop.xlane.xlu0 %34 }
  0x8e   :  { %v36_v10 = vadd.f32 1.0, %v35_v9  ;;  %vm120_vm2 = vcmp.eq.f32.partialorder %v35_v9, 0.0  ;;  %v39_v12 = vmul.f32 -0.5, %v35_v9  ;;  %v42_v15 = vand.u32 2147483647, %v35_v9 }
  0x8f   :  { %v121_v11 = vsel %vm120_vm2, 1.0, %v35_v9 }
  0x90   :  { %314 = vlog2.f32 %v36_v10  ;;  %v40_v13 = vadd.f32 1.0, %v39_v12  ;;  %vm43_vm3 = vcmp.lt.f32.partialorder %v42_v15, 0.0004427343 }
  0x91   :  { %316 = vrcp.f32 %v121_v11 }
  0x92   :  { %v41_v17 = vmul.f32 %v40_v13, %v35_v9 }
  0x9d   :  { %v315_v14 = vpop.eup %314 }
  0x9e   :  { %v38_v16 = vmul.f32 0.6931472, %v315_v14  ;;  %v317_v20 = vpop.eup %316 }
  0xa0   :  { %v44_v18 = vsel %vm43_vm3, %v41_v17, %v38_v16 }
  0xa1   :  { %v131_v23 = vmul.f32 %v280_v19, %v44_v18 }
  0xc5   :  { %v116_v21 = vpop.f32.mrf.mxu0 }
  0xc6   :  { %v123_v22 = vmul.f32 %v317_v20, %v116_v21 }
  0xc7   :  { %v300_v25 = vpop.f32.mrf.mxu0 }
  0xc8   :  { %v132_v26 = vadd.f32 %v131_v23, %v123_v22 }
  0xca   :  { %v140_v27 = vadd.f32 %v281_v24, %v132_v26 }
  0xcc   :  { %v142_v28 = vmin.f32 %v140_v27, 20.0  ;;  %vm141_vm6 = vcmp.gt.f32.partialorder %v140_v27, 20.0 }
  0xce   :  { %v143_v29 = vmul.f32 1.442695, %v142_v28 }
  0xd0   :  { %318 = vpow2.f32 %v143_v29 }
  0xdd   :  { %v319_v30 = vpop.eup %318 }
  0xde   :  { %v145_v31 = vadd.f32 1.0, %v319_v30  ;;  %v148_v32 = vmul.f32 -0.5, %v319_v30  ;;  %v151_v34 = vand.u32 2147483647, %v319_v30 }
  0xe0   :  { %320 = vlog2.f32 %v145_v31  ;;  %v149_v33 = vadd.f32 1.0, %v148_v32  ;;  %vm152_vm4 = vcmp.lt.f32.partialorder %v151_v34, 0.0004427343 }
  0xe2   :  { %v150_v37 = vmul.f32 %v319_v30, %v149_v33 }
  0xed   :  { %v321_v35 = vpop.eup %320 }
  0xee   :  { %v147_v36 = vmul.f32 0.6931472, %v321_v35 }
  0xf0   :  { %v153_v38 = vsel %vm152_vm4, %v150_v37, %v147_v36 }
  0xf1   :  { %v154_v39 = vsel %vm141_vm6, %v140_v27, %v153_v38 }
  0xf2   :  { %310 = vmatmul.mubr.msk.f32.vlgmr.msra.gmra.mxu1 %vm166_vm5, %v154_v39 }
 0x1b2   :  { %v236_v42 = vpop.f32.mrf.mxu1 }
 0x1b3   :  { %v237_v43 = vadd.f32 %v282_v41, %v236_v42 }
 0x1b4   :  { %v311_v44 = vpop.f32.mrf.mxu1 }
 0x1b5   :  { %v241_v45 = vmin.f32 %v237_v43, 20.0  ;;  %vm240_vm8 = vcmp.gt.f32.partialorder %v237_v43, 20.0 }
 0x1b7   :  { %v242_v46 = vmul.f32 1.442695, %v241_v45 }
 0x1b9   :  { %322 = vpow2.f32 %v242_v46 }
 0x1c6   :  { %v323_v47 = vpop.eup %322 }
 0x1c7   :  { %v244_v48 = vadd.f32 1.0, %v323_v47  ;;  %v247_v49 = vmul.f32 -0.5, %v323_v47  ;;  %v250_v51 = vand.u32 2147483647, %v323_v47 }
 0x1c9   :  { %324 = vlog2.f32 %v244_v48  ;;  %v248_v50 = vadd.f32 1.0, %v247_v49  ;;  %vm251_vm7 = vcmp.lt.f32.partialorder %v250_v51, 0.0004427343 }
 0x1cb   :  { %v249_v54 = vmul.f32 %v323_v47, %v248_v50 }
 0x1d6   :  { %v325_v52 = vpop.eup %324 }
 0x1d7   :  { %v246_v53 = vmul.f32 0.6931472, %v325_v52 }
 0x1d9   :  { %v252_v56 = vsel %vm251_vm7, %v249_v54, %v246_v53 }
 0x1da   :  { %v253_v57 = vsel %vm240_vm8, %v237_v43, %v252_v56 }
 0x1db   :  { %v262_v58 = vmul.f32 %v284_v55, %v253_v57 }
 0x1dd   :  { %v263_v59 = vsel %vm32_vm1, %v262_v58, 0.0 }
 0x1de   :  { %264 = vadd.xlane.f32.xlu0 %v263_v59 }
 0x267   :  { %v265_v61 = vpop.xlane.xlu0 %264 }
 0x268   :  { %v272_v62 = vadd.f32 %v285_v60, %v265_v61 }
 0x26a   :  { %274 = vst.msk [vmem:[%s423_s8] sm:$0xff] %vm273_vm9, %v272_v62 }

</bundles_post_ra>
